<compile_context>
chip_gen: v5e
topology: v5e:2x2
jax: 0.10.0
libtpu: 0.0.40
codegen_flags: <defaults>
</compile_context>

<pallas_src>
import functools

import jax
import jax.numpy as jnp
from jax.experimental import pallas as pl
from jax.experimental.pallas import tpu as pltpu


def _dice_partial_kernel(x_ref, t_ref, oi_ref, od_ref, *,
                         hw, tr, ro, blocks_per_chunk, use_sigmoid, ragged):
    p_id = pl.program_id(1)
    j = pl.program_id(2)

    @pl.when(j == 0)
    def _():
        oi_ref[...] = jnp.zeros_like(oi_ref)
        od_ref[...] = jnp.zeros_like(od_ref)

    x = x_ref[...].astype(jnp.float32)   # (1, C, TR, 128)
    t = t_ref[...].astype(jnp.float32)   # (1, C, TR, 128)

    if ragged:
        # Static gate: only compiled when the row blocks don't cover H*W exactly.
        # All three selects are required: x -> keep the softmax finite,
        # t -> OOB rows may hold garbage bits, prob -> padded columns must not
        # contribute to the dice denominator.
        row_blk = p_id * blocks_per_chunk + j
        row = jax.lax.broadcasted_iota(jnp.int32, (1, 1, tr, 128), 2) + row_blk * tr
        lane = jax.lax.broadcasted_iota(jnp.int32, (1, 1, tr, 128), 3)
        valid = (row * 128 + lane) < hw
        x = jnp.where(valid, x, 0.0)
        t = jnp.where(valid, t, 0.0)

    if use_sigmoid:
        prob = 1.0 / (1.0 + jnp.exp(-x))
    else:
        # Softmax over the channel axis (axis=1): C sits above the (sublane, lane)
        # tile, so max/sum are pure cross-slab VPU ops.
        m = jnp.max(x, axis=1, keepdims=True)              # (1, 1, TR, 128)
        e = jnp.exp(x - m)
        s = jnp.sum(e, axis=1, keepdims=True)              # (1, 1, TR, 128)
        prob = e * pl.reciprocal(s, approx=True)           # (1, C, TR, 128)

    if ragged:
        prob = jnp.where(valid, prob, 0.0)

    inter = prob * t                                       # (1, C, TR, 128)
    den = prob + t                                         # (1, C, TR, 128)

    c = inter.shape[1]
    if tr != ro:
        # Tree-style row reduction TR -> RO (sublane-dense accumulator), VPU only.
        inter = jnp.sum(inter.reshape(1, c, tr // ro, ro, 128), axis=2)
        den = jnp.sum(den.reshape(1, c, tr // ro, ro, 128), axis=2)

    oi_ref[...] += inter.reshape(oi_ref.shape)
    od_ref[...] += den.reshape(od_ref.shape)


def multilabel_soft_dice_loss(outputs, targets, weights=None):
    """outputs: (N, C, H, W) logits; targets: (N, C, H, W) masks (any dtype). Scalar f32."""
    N, C, H, W = outputs.shape
    HW = H * W
    if weights is None:
        weights = jnp.ones((C,), jnp.float32)
    else:
        weights = jnp.asarray(weights, jnp.float32)

    # ---- layout: (N, C, H, W) -> (N, C, R, 128), native dtypes (no upcast copies) ----
    x3 = outputs.reshape(N, C, HW)
    t3 = targets.reshape(N, C, HW)
    pad = (-HW) % 128
    if pad:
        # TODO(synk): one-time pad copy only when H*W is not 128-aligned; padded
        # columns are masked inside the kernel so they never reach the dice sums.
        x3 = jnp.pad(x3, ((0, 0), (0, 0), (0, pad)))
        t3 = jnp.pad(t3, ((0, 0), (0, 0), (0, pad)))
    R = (HW + pad) // 128
    x4 = x3.reshape(N, C, R, 128)
    t4 = t3.reshape(N, C, R, 128)

    # ---- VMEM-budget-driven tile size (generation aware: v7x has 64 MiB VMEM) ----
    try:
        vmem_cap = int(pltpu.get_tpu_info().vmem_capacity_bytes)
    except Exception:
        vmem_cap = 64 * 1024 * 1024          # conservative fallback (v7x-sized)
    vmem_limit = int(min(vmem_cap * 3 // 4, 96 * 1024 * 1024))
    # Per grid step: 2 inputs x 2 pipeline buffers + ~6 f32-sized intermediates of the
    # block; a factor-of-12 f32 budget keeps double buffering intact under the limit.
    row_bytes_f32 = C * 128 * 4
    tr_budget = max(8, vmem_limit // (12 * row_bytes_f32))
    if R <= tr_budget:
        tr = R                               # full spatial extent per batch element
    else:
        tr = max(8, (tr_budget // 8) * 8)    # sublane-aligned multi-MiB tile
    nb = pl.cdiv(R, tr)                      # row blocks per batch element

    # v7x megacore: if the batch axis alone can't feed both TensorCores, split the row
    # blocks into a second 'parallel' axis (harmless on single-TC v5e/v6e).
    P = 2 if (N == 1 and nb >= 2 and nb % 2 == 0) else 1
    J = nb // P

    ro = 8 if tr % 8 == 0 else tr            # accumulator rows (sublane-dense stores)
    ragged = (HW % 128 != 0) or (R % tr != 0)
    use_sigmoid = (C == 1)

    kernel = functools.partial(
        _dice_partial_kernel, hw=HW, tr=tr, ro=ro, blocks_per_chunk=J,
        use_sigmoid=use_sigmoid, ragged=ragged)

    inter_p, den_p = pl.pallas_call(
        kernel,
        out_shape=(jax.ShapeDtypeStruct((N, P, C, ro, 128), jnp.float32),
                   jax.ShapeDtypeStruct((N, P, C, ro, 128), jnp.float32)),
        grid_spec=pltpu.PrefetchScalarGridSpec(
            num_scalar_prefetch=0,
            grid=(N, P, J),
            in_specs=[
                pl.BlockSpec((1, C, tr, 128), lambda n, p, j: (n, 0, p * J + j, 0)),
                pl.BlockSpec((1, C, tr, 128), lambda n, p, j: (n, 0, p * J + j, 0)),
            ],
            out_specs=[
                pl.BlockSpec((1, 1, C, ro, 128), lambda n, p, j: (n, p, 0, 0, 0)),
                pl.BlockSpec((1, 1, C, ro, 128), lambda n, p, j: (n, p, 0, 0, 0)),
            ],
        ),
        compiler_params=pltpu.CompilerParams(
            dimension_semantics=("parallel", "parallel", "arbitrary"),
            vmem_limit_bytes=vmem_limit),
    )(x4, t4)

    # Tiny final reduction + weighted dice formula in plain JAX.
    inter_c = jnp.sum(inter_p, axis=(0, 1, 3, 4))          # (C,)
    den_c = jnp.sum(den_p, axis=(0, 1, 3, 4))              # (C,)
    eps = 1e-4                                             # matches torch dice_loss eps
    numerator = 2.0 * inter_c + eps
    denominator = den_c + eps
    loss_per_channel = weights * (1.0 - numerator / denominator)
    return jnp.sum(loss_per_channel) / C


def _reference(outputs, targets, weights=None):
    N, C, H, W = outputs.shape
    if weights is None:
        weights = jnp.ones((C,), jnp.float32)
    x = outputs.astype(jnp.float32)
    p = jax.nn.softmax(x, axis=1) if C > 1 else jax.nn.sigmoid(x)
    t = targets.astype(jnp.float32)
    eps = 1e-4
    num = 2.0 * jnp.sum(p * t, axis=(0, 2, 3)) + eps
    den = jnp.sum(p + t, axis=(0, 2, 3)) + eps
    lpc = weights * (1.0 - num / den)
    return jnp.sum(lpc) / C


if __name__ == "__main__":
    key = jax.random.PRNGKey(0)
    kx, kt = jax.random.split(key)

    N, C, H, W = 2, 4, 16, 16
    outputs = jax.random.normal(kx, (N, C, H, W), dtype=jnp.float32)
    # Multi-label float targets (one-hot masks), NCHW like the torch module expects.
    labels = jax.random.randint(kt, (N, H, W), 0, C, dtype=jnp.int32)
    targets = jnp.transpose(jax.nn.one_hot(labels, C, dtype=jnp.float32), (0, 3, 1, 2))

    loss = multilabel_soft_dice_loss(outputs, targets)
    loss = jax.block_until_ready(loss)

    ref = _reference(outputs, targets)
    assert jnp.allclose(loss, ref, atol=1e-4, rtol=1e-4), (loss, ref)

    print("KERNEL_OK")
</pallas_src>

<mosaic_0001>
module attributes {stable_mosaic.version = 11 : i64} {
  func.func @_dice_partial_kernel(%arg0: i32, %arg1: i32, %arg2: i32, %arg3: memref<1x4x2x128xf32, #tpu.memory_space<vmem>>, %arg4: memref<1x4x2x128xf32, #tpu.memory_space<vmem>>, %arg5: memref<1x1x4x2x128xf32, #tpu.memory_space<vmem>>, %arg6: memref<1x1x4x2x128xf32, #tpu.memory_space<vmem>>) attributes {dimension_semantics = [#tpu.dimension_semantics<parallel>, #tpu.dimension_semantics<parallel>, #tpu.dimension_semantics<arbitrary>], iteration_bounds = array<i64: 2, 1, 1>, scalar_prefetch = 0 : i64, scratch_operands = 0 : i64, tpu.core_type = #tpu.core_type<tc>, window_params = [{transform_indices = @transform_0, window_bounds = array<i64: 1, 4, 2, 128>}, {transform_indices = @transform_1, window_bounds = array<i64: 1, 4, 2, 128>}, {transform_indices = @transform_2, window_bounds = array<i64: 1, 1, 4, 2, 128>}, {transform_indices = @transform_3, window_bounds = array<i64: 1, 1, 4, 2, 128>}]} {
    %c0_i32 = arith.constant 0 : i32
    %0 = arith.cmpi eq, %arg2, %c0_i32 : i32
    %1 = arith.extui %0 : i1 to i32
    %c0_i32_0 = arith.constant 0 : i32
    %2 = arith.cmpi ne, %1, %c0_i32_0 : i32
    scf.if %2 {
      %cst_29 = arith.constant 0.000000e+00 : f32
      %25 = vector.broadcast %cst_29 : f32 to vector<1x1x4x2x128xf32>
      %c0_30 = arith.constant 0 : index
      %c0_31 = arith.constant 0 : index
      %c0_32 = arith.constant 0 : index
      %c0_33 = arith.constant 0 : index
      %c0_34 = arith.constant 0 : index
      %26 = vector.load %arg5[%c0_30, %c0_31, %c0_32, %c0_33, %c0_34] : memref<1x1x4x2x128xf32, #tpu.memory_space<vmem>>, vector<1x1x4x2x128xf32>
      tpu.vector_store %arg5[%c0_30, %c0_31, %c0_32, %c0_33, %c0_34], %25 {strides = array<i32>} : memref<1x1x4x2x128xf32, #tpu.memory_space<vmem>>, vector<1x1x4x2x128xf32>,
      %cst_35 = arith.constant 0.000000e+00 : f32
      %27 = vector.broadcast %cst_35 : f32 to vector<1x1x4x2x128xf32>
      %c0_36 = arith.constant 0 : index
      %c0_37 = arith.constant 0 : index
      %c0_38 = arith.constant 0 : index
      %c0_39 = arith.constant 0 : index
      %c0_40 = arith.constant 0 : index
      %28 = vector.load %arg6[%c0_36, %c0_37, %c0_38, %c0_39, %c0_40] : memref<1x1x4x2x128xf32, #tpu.memory_space<vmem>>, vector<1x1x4x2x128xf32>
      tpu.vector_store %arg6[%c0_36, %c0_37, %c0_38, %c0_39, %c0_40], %27 {strides = array<i32>} : memref<1x1x4x2x128xf32, #tpu.memory_space<vmem>>, vector<1x1x4x2x128xf32>,
    } else {
    }
    %c0 = arith.constant 0 : index
    %c0_1 = arith.constant 0 : index
    %c0_2 = arith.constant 0 : index
    %c0_3 = arith.constant 0 : index
    %3 = vector.load %arg3[%c0, %c0_1, %c0_2, %c0_3] : memref<1x4x2x128xf32, #tpu.memory_space<vmem>>, vector<1x4x2x128xf32>
    %c0_4 = arith.constant 0 : index
    %c0_5 = arith.constant 0 : index
    %c0_6 = arith.constant 0 : index
    %c0_7 = arith.constant 0 : index
    %4 = vector.load %arg4[%c0_4, %c0_5, %c0_6, %c0_7] : memref<1x4x2x128xf32, #tpu.memory_space<vmem>>, vector<1x4x2x128xf32>
    %cst = arith.constant dense<0xFF800000> : vector<1x2x128xf32>
    %5 = vector.multi_reduction <maximumf>, %3, %cst [1] : vector<1x4x2x128xf32> to vector<1x2x128xf32>
    %6 = vector.shape_cast %5 : vector<1x2x128xf32> to vector<1x1x2x128xf32>
    %7 = vector.broadcast %6 : vector<1x1x2x128xf32> to vector<1x4x2x128xf32>
    %8 = arith.subf %3, %7 : vector<1x4x2x128xf32>
    %9 = math.exp %8 : vector<1x4x2x128xf32>
    %cst_8 = arith.constant dense<0.000000e+00> : vector<1x2x128xf32>
    %10 = vector.multi_reduction <add>, %9, %cst_8 [1] : vector<1x4x2x128xf32> to vector<1x2x128xf32>
    %11 = vector.shape_cast %10 : vector<1x2x128xf32> to vector<1x1x2x128xf32>
    %12 = tpu.reciprocal %11 {approx = true} : vector<1x1x2x128xf32> -> vector<1x1x2x128xf32>
    %13 = vector.broadcast %12 : vector<1x1x2x128xf32> to vector<1x4x2x128xf32>
    %14 = arith.mulf %9, %13 : vector<1x4x2x128xf32>
    %15 = arith.mulf %14, %4 : vector<1x4x2x128xf32>
    %16 = arith.addf %14, %4 : vector<1x4x2x128xf32>
    %c0_9 = arith.constant 0 : index
    %c0_10 = arith.constant 0 : index
    %c0_11 = arith.constant 0 : index
    %c0_12 = arith.constant 0 : index
    %c0_13 = arith.constant 0 : index
    %17 = vector.load %arg5[%c0_9, %c0_10, %c0_11, %c0_12, %c0_13] : memref<1x1x4x2x128xf32, #tpu.memory_space<vmem>>, vector<1x1x4x2x128xf32>
    %18 = vector.shape_cast %15 : vector<1x4x2x128xf32> to vector<1x1x4x2x128xf32>
    %19 = arith.addf %17, %18 : vector<1x1x4x2x128xf32>
    %c0_14 = arith.constant 0 : index
    %c0_15 = arith.constant 0 : index
    %c0_16 = arith.constant 0 : index
    %c0_17 = arith.constant 0 : index
    %c0_18 = arith.constant 0 : index
    %20 = vector.load %arg5[%c0_14, %c0_15, %c0_16, %c0_17, %c0_18] : memref<1x1x4x2x128xf32, #tpu.memory_space<vmem>>, vector<1x1x4x2x128xf32>
    tpu.vector_store %arg5[%c0_14, %c0_15, %c0_16, %c0_17, %c0_18], %19 {strides = array<i32>} : memref<1x1x4x2x128xf32, #tpu.memory_space<vmem>>, vector<1x1x4x2x128xf32>,
    %c0_19 = arith.constant 0 : index
    %c0_20 = arith.constant 0 : index
    %c0_21 = arith.constant 0 : index
    %c0_22 = arith.constant 0 : index
    %c0_23 = arith.constant 0 : index
    %21 = vector.load %arg6[%c0_19, %c0_20, %c0_21, %c0_22, %c0_23] : memref<1x1x4x2x128xf32, #tpu.memory_space<vmem>>, vector<1x1x4x2x128xf32>
    %22 = vector.shape_cast %16 : vector<1x4x2x128xf32> to vector<1x1x4x2x128xf32>
    %23 = arith.addf %21, %22 : vector<1x1x4x2x128xf32>
    %c0_24 = arith.constant 0 : index
    %c0_25 = arith.constant 0 : index
    %c0_26 = arith.constant 0 : index
    %c0_27 = arith.constant 0 : index
    %c0_28 = arith.constant 0 : index
    %24 = vector.load %arg6[%c0_24, %c0_25, %c0_26, %c0_27, %c0_28] : memref<1x1x4x2x128xf32, #tpu.memory_space<vmem>>, vector<1x1x4x2x128xf32>
    tpu.vector_store %arg6[%c0_24, %c0_25, %c0_26, %c0_27, %c0_28], %23 {strides = array<i32>} : memref<1x1x4x2x128xf32, #tpu.memory_space<vmem>>, vector<1x1x4x2x128xf32>,
    return
  }
  func.func @transform_0(%arg0: i32, %arg1: i32, %arg2: i32) -> (i32, i32, i32, i32) {
    %c1_i32 = arith.constant 1 : i32
    %0 = arith.muli %arg1, %c1_i32 : i32
    %1 = arith.addi %0, %arg2 : i32
    %c0_i32 = arith.constant 0 : i32
    %c0_i32_0 = arith.constant 0 : i32
    %c0_i32_1 = arith.constant 0 : i32
    return %arg0, %c0_i32, %1, %c0_i32_0 : i32, i32, i32, i32
  }
  func.func @transform_1(%arg0: i32, %arg1: i32, %arg2: i32) -> (i32, i32, i32, i32) {
    %c1_i32 = arith.constant 1 : i32
    %0 = arith.muli %arg1, %c1_i32 : i32
    %1 = arith.addi %0, %arg2 : i32
    %c0_i32 = arith.constant 0 : i32
    %c0_i32_0 = arith.constant 0 : i32
    %c0_i32_1 = arith.constant 0 : i32
    return %arg0, %c0_i32, %1, %c0_i32_0 : i32, i32, i32, i32
  }
  func.func @transform_2(%arg0: i32, %arg1: i32, %arg2: i32) -> (i32, i32, i32, i32, i32) {
    %c0_i32 = arith.constant 0 : i32
    %c0_i32_0 = arith.constant 0 : i32
    %c0_i32_1 = arith.constant 0 : i32
    %c0_i32_2 = arith.constant 0 : i32
    return %arg0, %arg1, %c0_i32, %c0_i32_0, %c0_i32_1 : i32, i32, i32, i32, i32
  }
  func.func @transform_3(%arg0: i32, %arg1: i32, %arg2: i32) -> (i32, i32, i32, i32, i32) {
    %c0_i32 = arith.constant 0 : i32
    %c0_i32_0 = arith.constant 0 : i32
    %c0_i32_1 = arith.constant 0 : i32
    %c0_i32_2 = arith.constant 0 : i32
    return %arg0, %arg1, %c0_i32, %c0_i32_0, %c0_i32_1 : i32, i32, i32, i32, i32
  }
}

</mosaic_0001>

<bundles_post_ra>
// kernel: tpu_custom_call.1
= control target key start
LH: loop header
LB: loop body
LE: loop exit
PB: predicated region body
PF: predicated region fallthrough
CT: control target
= control target key end

     0   :  { %s1087_s0 = inlined_call_operand.hbm [shape: f32[2,4,2,128], index: 0, kind: input, shape index: {}]   ;;  %s1088_s1 = inlined_call_operand.hbm [shape: f32[2,4,2,128], index: 1, kind: input, shape index: {}]   ;;  %s1089_s2 = inlined_call_operand.hbm [shape: f32[2,1,4,2,128], index: 2, kind: output, shape index: {0}]   ;;  %s1090_s3 = inlined_call_operand.hbm [shape: f32[2,1,4,2,128], index: 3, kind: output, shape index: {1}]  }
   0x1   :  { %1091 = sst [smem:[#allocation14_spill]] %s1087_s0 }
   0x2   :  { %9 = vsyncpa [#allocation3], 0 }
   0x3   :  { %11 = vsyncpa [#allocation3 + $0x1], 0 }
   0x4   :  { %12 = vsyncpa [#allocation6], 0 }
   0x5   :  { %14 = vsyncpa [#allocation6 + $0x1], 0 }
   0x6   :  { %15 = vsyncpa [#allocation4], 0 }
   0x7   :  { %17 = vsyncpa [#allocation4 + $0x1], 0 }
   0x8   :  { %18 = vsyncpa [#allocation9], 0 }
   0x9   :  { %20 = vsyncpa [#allocation9 + $0x1], 0  ;;  %s878_s12 = smov 0   ;;  %s880_s13 = smov 0  }
   0xa   :  { %s882_s14 = smov 0   ;;  %s884_s15 = smov 0  }
   0xb   :  { %s886_s16 = smov 0   ;;  %s888_s17 = smov 0  }
   0xc LB: > { %s559_s18 = sadd.s32 4294967295, %s851_s17   ;;  %s560_s19 = sadd.s32 4294967294, %s851_s17   ;;  %s851_s17 = sphi %s888_s17, %s26_s17   ;;  %s847_s16 = sphi %s886_s16, %s1102_s16   ;;  %s843_s15 = sphi %s884_s15, %s1101_s15   ;;  %s839_s14 = sphi %s882_s14, %s1100_s14   ;;  %s835_s13 = sphi %s880_s13, %s1099_s13   ;;  %s831_s12 = sphi %s878_s12, %s1098_s12  }
   0xd   : > { %s45_s20 = sadd.s32 1, %s847_s16  ;;  %s56_s21 = sadd.s32 1, %s839_s14 }
   0xe   : > { %p47_p0 = scmp.ge.s32.totalorder %s45_s20, 2  ;;  %p63_p1 = scmp.ne.s32.totalorder %s839_s14, %s835_s13 }
   0xf   : > { %p64_p2 = scmp.eq.s32.totalorder %s851_s17, 0  ;;  %p69_p3 = scmp.ne.s32.totalorder %s835_s13, %s831_s12 }
  0x10   : > { %s1104_s20 = smov (%p47_p0, %s45_s20), 0  ;;  %p70_p5 = scmp.eq.s32.totalorder %s559_s18, 0 }
  0x11   : > { %p919_p4 = por %p64_p2, %p63_p1  ;;  %s51_s23 = ssub.s32 %s847_s16, %s1104_s20 }
  0x12   : > { %p125_p6 = scmp.eq.s32.totalorder %s559_s18, 1  ;;  %p54_p7 = scmp.eq.s32.totalorder %s51_s23, 0 }
  0x13   : > { %p925_p8 = por %p70_p5, %p69_p3  ;;  %p131_p10 = scmp.eq.s32.totalorder %s560_s19, 1 }
  0x14   : > { %p929_p9 = por %p125_p6, %p63_p1  ;;  %p562_p12 = scmp.ge.s32.totalorder %s851_s17, 2 }
  0x15   : > { %s934_s26 = scalar_select %p54_p7, %s839_s14, %s56_s21  }
  0x16   : > { %p936_p11 = por %p131_p10, %p69_p3  ;;  %p608_p13 = scmp.lt.s32.totalorder %s851_s17, 2 }
  0x17   : > { %s943_s28 = sand.u32 1, %s839_s14   ;;  %s582_s30 = sshll.u32 %s847_s16, 3 }
  0x18   : > { %s563_s29 = sshll.u32 %s943_s28, 3  ;;  %s1096_s0 = sld [smem:[#allocation14_spill]] }
  0x19   : > { %s183_s7 = scalar_lea.vmem [#allocation2], %s563_s29  ;;  %p952_p0 = pnand %p608_p13, %p919_p4 }
  0x1a   : > { %s193_s8 = sshll.u32 %s183_s7, 4  ;;  %p569_p1 = scmp.ge.s32.totalorder %s851_s17, 1  ;;  %s194_s8 = int_to_ptr.vmem [resolvable:$true] %s193_s8 }
  0x1b   : > { %s180_s11 = scalar_lea.sflag [#allocation3], %s943_s28  ;;  %s853_s18 = smov 32  }
  0x1c   : > { %s854_s19 = smov 2   ;;  %p225_p2 = scmp.lt.s32.totalorder %s851_s17, 3 }
  0x1d   : > { %s214_s4 = scalar_lea.hbm %s1088_s1, %s582_s30  ;;  %s207_s22 = scalar_lea.vmem [#allocation5], %s563_s29 }
  0x1e   : > { %s190_s6 = scalar_lea.hbm %s1096_s0, %s582_s30  ;;  %p226_p3 = pnand %p569_p1, %p225_p2 }
  0x1f   : > { %s191_s9 = sshll.u32 %s190_s6, 4  ;;  %s215_s5 = sshll.u32 %s214_s4, 4  ;;  %s192_s9 = int_to_ptr.hbm [resolvable:$true] %s191_s9  ;;  %s216_s5 = int_to_ptr.hbm [resolvable:$true] %s215_s5 }
  0x20   : > { %597 = dma.hbm_to_vmem [thread:$0]  (!%p952_p0), %s192_s9, 128, %s194_s8, %s180_s11, %s853_s18, %s853_s18, %s854_s19  }
  0x21   : > { %s217_s6 = sshll.u32 %s207_s22, 4  ;;  %s204_s7 = scalar_lea.sflag [#allocation6], %s943_s28  ;;  %s218_s6 = int_to_ptr.vmem [resolvable:$true] %s217_s6 }
  0x22   : > { %600 = dma.hbm_to_vmem [thread:$0]  (!%p952_p0), %s216_s5, 128, %s218_s6, %s204_s7, %s853_s18, %s853_s18, %s854_s19  }
  0x23   : > { %229 = sbr.rel (%p226_p3) target bundleno = 108 (0x6c), region = 28  ;;  %s968_s0 = sand.u32 (!%p226_p3), 1, %s835_s13  }
  0x24   : > { %s570_s8 = sshll.u32 (!%p226_p3), %s968_s0, 3  ;;  %s232_s9 = scalar_lea.sflag (!%p226_p3), [#allocation3], %s968_s0 }
  0x25   : > { %s235_s11 = scalar_lea.vmem (!%p226_p3), [#allocation2], %s570_s8 }
  0x28   : > { %814 = dma.done.wait (%p925_p8), %s232_s9, 128  }
  0x29   : > { %816 = vsyncadd (%p925_p8), %s232_s9, 4294967168  ;;  %s242_s28 = scalar_lea.sflag [#allocation6], %s968_s0  ;;  %s977_s29 = scalar_lea.vmem [#allocation5], %s570_s8 }
  0x2a   : > { %818 = dma.done.wait (%p925_p8), %s242_s28, 128  }
  0x2b   : > { %820 = vsyncadd (%p925_p8), %s242_s28, 4294967168  ;;  %s983_s30 = scalar_lea.vmem [#allocation7], %s570_s8  ;;  %v855_v0 = vmov 0.0   ;;  %s989_s10 = scalar_lea.vmem [#allocation8], %s570_s8  ;;  %vm301_vm0 = vcmask 1041408  }
  0x2c   : > { %285 = vst [vmem:[%s983_s30] sm:$0x3] %v855_v0  ;;  %v293_v1 = vld [vmem:[%s235_s11] sm:$0x3]  ;;  %v294_v2 = vld [vmem:[%s235_s11 + $0x2] sm:$0x3]  ;;  %s584_s24 = sshll.u32 %s843_s15, 3 }
  0x2d   : > { %286 = vst [vmem:[%s983_s30 + $0x2] sm:$0x3] %v855_v0  ;;  %v295_v3 = vld [vmem:[%s235_s11 + $0x4] sm:$0x3]  ;;  %v296_v4 = vld [vmem:[%s235_s11 + $0x6] sm:$0x3]  ;;  %s384_s19 = scalar_lea.hbm %s1089_s2, %s584_s24  ;;  %s403_s5 = scalar_lea.hbm %s1090_s3, %s584_s24 }
  0x2e   : > { %287 = vst [vmem:[%s983_s30 + $0x4] sm:$0x3] %v855_v0  ;;  %v302_v5 = vsel %vm301_vm0, %v293_v1, -inf  ;;  %v303_v6 = vsel %vm301_vm0, %v294_v2, -inf  ;;  %v304_v7 = vsel %vm301_vm0, %v295_v3, -inf  ;;  %v305_v8 = vsel %vm301_vm0, %v296_v4, -inf }
  0x2f   : > { %288 = vst [vmem:[%s983_s30 + $0x6] sm:$0x3] %v855_v0  ;;  %v306_v9 = vmax.f32 %v302_v5, %v303_v6  ;;  %v307_v10 = vmax.f32 %v304_v7, %v305_v8  ;;  %v297_v31 = vld [vmem:[%s977_s29] sm:$0x3]  ;;  %v298_v33 = vld [vmem:[%s977_s29 + $0x2] sm:$0x3] }
  0x30   : > { %289 = vst [vmem:[%s989_s10] sm:$0x3] %v855_v0  ;;  %v299_v34 = vld [vmem:[%s977_s29 + $0x4] sm:$0x3]  ;;  %v300_v35 = vld [vmem:[%s977_s29 + $0x6] sm:$0x3]  ;;  %s385_s21 = sshll.u32 %s983_s30, 4  ;;  %s1026_s21 = int_to_ptr.vmem [resolvable:$true] %s385_s21 }
  0x31   : > { %290 = vst [vmem:[%s989_s10 + $0x2] sm:$0x3] %v855_v0  ;;  %v308_v11 = vmax.f32 %v306_v9, %v307_v10  ;;  %s387_s22 = sshll.u32 %s384_s19, 4  ;;  %s404_s6 = sshll.u32 %s989_s10, 4  ;;  %s388_s22 = int_to_ptr.hbm [resolvable:$true] %s387_s22  ;;  %s1033_s6 = int_to_ptr.vmem [resolvable:$true] %s404_s6 }
  0x32   : > { %291 = vst [vmem:[%s989_s10 + $0x4] sm:$0x3] %v855_v0  ;;  %s406_s7 = sshll.u32 %s403_s5, 4  ;;  %s366_s8 = scalar_lea.sflag [#allocation4], %s968_s0  ;;  %s1035_s7 = int_to_ptr.hbm [resolvable:$true] %s406_s7 }
  0x33   : > { %292 = vst [vmem:[%s989_s10 + $0x6] sm:$0x3] %v855_v0  ;;  %v309_v12 = vsub.f32 %v293_v1, %v308_v11  ;;  %v310_v13 = vsub.f32 %v294_v2, %v308_v11  ;;  %v311_v14 = vsub.f32 %v295_v3, %v308_v11  ;;  %v312_v15 = vsub.f32 %v296_v4, %v308_v11  ;;  %v341_v40 = vld [vmem:[%s983_s30] sm:$0x3]  ;;  %s747_s9 = sshra.s32 %s388_s22, 4  ;;  %s748_s9 = int_to_ptr.hbm [resolvable:$true] %s747_s9 }
  0x34   : > { %v342_v41 = vld [vmem:[%s983_s30 + $0x2] sm:$0x3]  ;;  %s749_s11 = scalar_lea.hbm %s748_s9, 8  ;;  %p754_p7 = scmp.lt.s32.totalorder %s748_s9, %s1089_s2 }
  0x35   : > { %v313_v16 = vmul.f32 1.442695, %v309_v12  ;;  %v315_v17 = vmul.f32 1.442695, %v310_v13  ;;  %v317_v18 = vmul.f32 1.442695, %v311_v14  ;;  %p750_p4 = scmp.ne.s32.totalorder %s748_s9, %s749_s11 }
  0x36   : > { %v319_v19 = vmul.f32 1.442695, %v312_v15  ;;  %v343_v42 = vld [vmem:[%s983_s30 + $0x4] sm:$0x3]  ;;  %v344_v47 = vld [vmem:[%s983_s30 + $0x6] sm:$0x3] }
  0x37   : > { %663 = vpow2.f32 %v313_v16  ;;  %v353_v49 = vld [vmem:[%s989_s10] sm:$0x3]  ;;  %p751_p5 = pnand %p750_p4, %p929_p9 }
  0x38   : > { %665 = vpow2.f32 %v315_v17  ;;  %v354_v54 = vld [vmem:[%s989_s10 + $0x2] sm:$0x3] }
  0x39   : > { %667 = vpow2.f32 %v317_v18  ;;  %v355_v57 = vld [vmem:[%s989_s10 + $0x4] sm:$0x3]  ;;  %p752_p6 = pneg %p751_p5 }
  0x3a   : > { %669 = vpow2.f32 %v319_v19  ;;  %v356_v60 = vld [vmem:[%s989_s10 + $0x6] sm:$0x3] }
  0x3d   : > { %v664_v20 = vpop.eup %663 }
  0x3e   : > { %v666_v21 = vpop.eup %665  ;;  %v321_v22 = vsel %vm301_vm0, %v664_v20, 0.0 }
  0x3f   : > { %v668_v23 = vpop.eup %667  ;;  %v322_v24 = vsel %vm301_vm0, %v666_v21, 0.0 }
  0x40   : > { %v670_v25 = vpop.eup %669  ;;  %v323_v26 = vadd.f32 %v322_v24, %v321_v22  ;;  %v324_v27 = vsel %vm301_vm0, %v668_v23, 0.0 }
  0x41   : > { %v326_v28 = vsel %vm301_vm0, %v670_v25, 0.0 }
  0x42   : > { %v325_v29 = vadd.f32 %v324_v27, %v323_v26 }
  0x44   : > { %v327_v30 = vadd.f32 %v326_v28, %v325_v29 }
  0x46   : > { %671 = vrcp.f32 %v327_v30 }
  0x4c   : > { %v672_v32 = vpop.eup %671 }
  0x4d   : > { %v329_v36 = vmul.f32 %v672_v32, %v664_v20  ;;  %v330_v37 = vmul.f32 %v672_v32, %v666_v21  ;;  %v331_v38 = vmul.f32 %v672_v32, %v668_v23  ;;  %v332_v39 = vmul.f32 %v672_v32, %v670_v25 }
  0x4f   : > { %v333_v43 = vmul.f32 %v329_v36, %v297_v31  ;;  %v334_v44 = vmul.f32 %v330_v37, %v298_v33  ;;  %v335_v45 = vmul.f32 %v331_v38, %v299_v34  ;;  %v336_v46 = vmul.f32 %v332_v39, %v300_v35 }
  0x50   : > { %v337_v48 = vadd.f32 %v329_v36, %v297_v31  ;;  %v338_v50 = vadd.f32 %v330_v37, %v298_v33  ;;  %v339_v55 = vadd.f32 %v331_v38, %v299_v34  ;;  %v340_v58 = vadd.f32 %v332_v39, %v300_v35 }
  0x51   : > { %v345_v51 = vadd.f32 %v341_v40, %v333_v43  ;;  %v346_v52 = vadd.f32 %v342_v41, %v334_v44  ;;  %v347_v53 = vadd.f32 %v343_v42, %v335_v45  ;;  %v348_v56 = vadd.f32 %v344_v47, %v336_v46 }
  0x52   : > { %v357_v59 = vadd.f32 %v353_v49, %v337_v48  ;;  %v358_v61 = vadd.f32 %v354_v54, %v338_v50  ;;  %v359_v62 = vadd.f32 %v355_v57, %v339_v55  ;;  %v360_v63 = vadd.f32 %v356_v60, %v340_v58 }
  0x53   : > { %349 = vst [vmem:[%s983_s30] sm:$0x3] %v345_v51 }
  0x54   : > { %350 = vst [vmem:[%s983_s30 + $0x2] sm:$0x3] %v346_v52 }
  0x55   : > { %351 = vst [vmem:[%s983_s30 + $0x4] sm:$0x3] %v347_v53 }
  0x56   : > { %352 = vst [vmem:[%s983_s30 + $0x6] sm:$0x3] %v348_v56  ;;  %s753_s30 = scalar_lea.hbm %s1089_s2, 16 }
  0x57   : > { %361 = vst [vmem:[%s989_s10] sm:$0x3] %v357_v59  ;;  %p755_p8 = scmp.lt.s32.totalorder %s753_s30, %s749_s11 }
  0x58   : > { %362 = vst [vmem:[%s989_s10 + $0x2] sm:$0x3] %v358_v61 }
  0x59   : > { %363 = vst [vmem:[%s989_s10 + $0x4] sm:$0x3] %v359_v62  ;;  %p756_p10 = por %p755_p8, %p754_p7 }
  0x5a   : > { %364 = vst [vmem:[%s989_s10 + $0x6] sm:$0x3] %v360_v63 }
  0x5b   : > { %p757_p13 = pnand %p756_p10, %p752_p6 }
  0x5d   : > { %760 = shalt.err (!%p757_p13)
}
  0x5e   : > { %s856_s10 = smov 32   ;;  %s857_s18 = smov 2  }
  0x5f   : > { %590 = dma.vmem_to_hbm [thread:$0]  (%p929_p9), %s1026_s21, 128, %s388_s22, %s366_s8, %s856_s10, %s856_s10, %s857_s18  }
  0x60   : > { %s371_s19 = scalar_lea.sflag [#allocation9], %s968_s0  ;;  %s775_s23 = sshra.s32 %s1035_s7, 4  ;;  %s776_s23 = int_to_ptr.hbm [resolvable:$true] %s775_s23 }
  0x61   : > { %s777_s4 = scalar_lea.hbm %s776_s23, 8  ;;  %s781_s11 = scalar_lea.hbm %s1090_s3, 16 }
  0x62   : > { %p778_p0 = scmp.ne.s32.totalorder %s776_s23, %s777_s4  ;;  %p782_p3 = scmp.lt.s32.totalorder %s776_s23, %s1090_s3 }
  0x63   : > { %p783_p4 = scmp.lt.s32.totalorder %s781_s11, %s777_s4 }
  0x64   : > { %p779_p1 = pnand %p778_p0, %p929_p9 }
  0x65   : > { %p784_p5 = por %p783_p4, %p782_p3 }
  0x66   : > { %p780_p2 = pneg %p779_p1 }
  0x68   : > { %p785_p6 = pnand %p784_p5, %p780_p2 }
  0x6a   : > { %788 = shalt.err (!%p785_p6)
}
  0x6b   : > { %591 = dma.vmem_to_hbm [thread:$0]  (%p929_p9), %s1033_s6, 128, %s1035_s7, %s371_s19, %s856_s10, %s856_s10, %s857_s18  }
  0x6c PF: > { %s421_s0 = sand.u32 1, %s831_s12   ;;  %p602_p7 = pnand %p562_p12, %p936_p11 }
  0x6d   : > { %s422_s21 = scalar_lea.sflag [#allocation4], %s421_s0 }
  0x6e   : > { %p603_p8 = pneg %p602_p7 }
  0x70   : > { %822 = dma.done.wait (%p603_p8), %s422_s21, 128  }
  0x71   : > { %824 = vsyncadd (%p603_p8), %s422_s21, 4294967168  ;;  %s432_s22 = scalar_lea.sflag [#allocation9], %s421_s0 }
  0x72   : > { %826 = dma.done.wait (%p603_p8), %s432_s22, 128  }
  0x73   : > { %828 = vsyncadd (%p603_p8), %s432_s22, 4294967168  ;;  %s26_s17 = sadd.s32 1, %s851_s17   ;;  %s1098_s12 = smov %s835_s13 }
  0x74   : > { %p23_p10 = scmp.ge.s32.totalorder %s26_s17, 4   ;;  %s1099_s13 = smov %s839_s14 }
  0x75   : > { %s1100_s14 = smov %s934_s26  ;;  %s1101_s15 = smov %s847_s16 }
  0x76   : > { %s1102_s16 = smov %s1104_s20  ;;  %25 = sbr.rel (!%p23_p10) target bundleno = 12 (0xc), region = 107 }
  0x7b   :  { %438 = vsyncpa [#allocation3], 1 }
  0x7c   :  { %440 = vsyncpa [#allocation3 + $0x1], 1 }
  0x7d   :  { %441 = vsyncpa [#allocation6], 1 }
  0x7e   :  { %443 = vsyncpa [#allocation6 + $0x1], 1 }
  0x7f   :  { %444 = vsyncpa [#allocation4], 1 }
  0x80   :  { %446 = vsyncpa [#allocation4 + $0x1], 1 }
  0x81   :  { %447 = vsyncpa [#allocation9], 1 }
  0x82   :  { %449 = vsyncpa [#allocation9 + $0x1], 1 }

</bundles_post_ra>
